<compile_context>
chip_gen: v7x
topology: tpu7x:2x2x1
jax: 0.10.0
libtpu: 0.0.40
codegen_flags: <defaults>
</compile_context>

<pallas_src>
import functools

import numpy as np
import jax
import jax.numpy as jnp
from jax import lax
from jax.experimental import pallas as pl
from jax.experimental.pallas import tpu as pltpu

_MIB = 1024 * 1024


@functools.lru_cache(maxsize=None)
def _roll_matches_jnp():
    """Probe pltpu.roll's rotation direction once (cached).

    True iff pltpu.roll(x, s, axis)[..., i] == x[..., i - s] (the jnp.roll
    convention).  The blur kernel only consumes the probed sign, so it is
    correct under either convention.
    """
    def probe(x_ref, o_ref):
        o_ref[...] = pltpu.roll(x_ref[...], 1, axis=1)

    x = jnp.tile(lax.iota(jnp.float32, 128)[None, :], (8, 1))
    y = pl.pallas_call(
        probe, out_shape=jax.ShapeDtypeStruct((8, 128), jnp.float32))(x)
    return bool(np.asarray(y)[0, 1] == 0.0)


def _vmem_capacity_bytes(default=64 * _MIB):
    """Physical VMEM per TensorCore, with a conservative fallback."""
    try:
        info = pltpu.get_tpu_info()
    except Exception:
        return default
    for name in ("vmem_capacity_bytes", "vmem_bytes", "vmem_capacity"):
        val = getattr(info, name, None)
        try:
            val = int(val)
        except (TypeError, ValueError):
            continue
        if val > 0:
            return val
    return default


def _pick_plane_block(nc, plane_bytes, budget_bytes, min_parallel_steps=2):
    """Channel planes per block: a multiple of 8 (sublane aligned) or the
    full N*C extent (block dim == full array dim is also a legal BlockSpec)."""
    fit = max(1, budget_bytes // max(plane_bytes, 1))
    if fit >= nc:
        # Everything fits in one block.  The grid axis is "parallel", so on
        # v7x (2 TensorCores) prefer >= 2 aligned steps when N*C allows it.
        if min_parallel_steps > 1 and nc >= 16:
            half = ((nc + 1) // 2 + 7) // 8 * 8
            if half < nc:
                return half
        return nc
    if nc < 8:
        # TODO(synk): N*C < 8 with planes larger than the VMEM budget would
        # need an H-split with halo rows; not needed for StyleGAN-size inputs.
        return nc
    return max(8, (fit // 8) * 8)


def _blur_kernel(x_ref, o_ref, *, hw, w, sh_um, sh_up, sh_hm, sh_hp,
                 k0, k1, k2, s0, s1, s2):
    """Separable 3x3 blur on a block of flattened channel planes.

    x_ref / o_ref: (BC, H*W) -- BC whole channel planes with the image
    flattened onto the lane axis.  All shifts are pltpu.roll (XLU); values
    that wrap across an image border are re-zeroed by the masks, which
    reproduces F.conv2d's zero padding exactly.
    """
    x = x_ref[...].astype(jnp.float32)
    pos = lax.broadcasted_iota(jnp.int32, x.shape, 1)

    # Vertical [k0,k1,k2] pass: H-neighbours are +-W along the flattened axis.
    xm = jnp.where(pos < w, 0.0, pltpu.roll(x, sh_um, axis=1))         # x[h-1, w]
    xp = jnp.where(pos >= hw - w, 0.0, pltpu.roll(x, sh_up, axis=1))   # x[h+1, w]
    t = k0 * xm + k1 * x + k2 * xp

    # Horizontal [k0,k1,k2] pass (1/sum^2 scale folded into s0/s1/s2):
    # W-neighbours are +-1 along lanes; row-wrap positions are zeroed.
    col = (pos & (w - 1)) if (w & (w - 1) == 0) else (pos % w)
    tm = jnp.where(col == 0, 0.0, pltpu.roll(t, sh_hm, axis=1))        # t[h, w-1]
    tp = jnp.where(col == w - 1, 0.0, pltpu.roll(t, sh_hp, axis=1))    # t[h, w+1]

    o_ref[...] = (s0 * tm + s1 * t + s2 * tp).astype(o_ref.dtype)


def blur(x, kernel=(1, 2, 1), normalize=True):
    """Forward of BlurLayer on the PyTorch NCHW layout (Pallas TPU kernel)."""
    N, C, H, W = x.shape
    if len(kernel) != 3:
        raise NotImplementedError("BlurLayer uses a 3-tap separable kernel.")

    k0, k1, k2 = (float(v) for v in kernel)
    ksum = k0 + k1 + k2
    scale = 1.0 / (ksum * ksum) if normalize else 1.0

    NC, HW = N * C, H * W
    elt = jnp.dtype(x.dtype).itemsize

    # Generation-aware VMEM budget (v7x: 64 MiB physical -> ~32 MiB scoped;
    # v5e/v6e: 128 MiB -> ~64 MiB).  The block budget accounts for the
    # double-buffered in/out blocks plus ~6 f32 intermediates.
    # TODO(synk): on v6e/v7x the two passes could run in bf16 for bf16 inputs
    # to halve the intermediate footprint; kept f32 for exact results.
    vmem_cap = _vmem_capacity_bytes()
    vmem_limit = int(min(max(vmem_cap // 2, 32 * _MIB), min(vmem_cap, 100 * _MIB)))
    denom = 4 + -(-24 // elt)                       # 2x in + 2x out + 6 f32 temps
    block_budget = min(4 * _MIB, max(256 * 1024, vmem_limit // denom))

    bc = _pick_plane_block(NC, HW * elt, block_budget)
    n_blocks = -(-NC // bc)

    sgn = 1 if _roll_matches_jnp() else -1
    kern = functools.partial(
        _blur_kernel, hw=HW, w=W,
        sh_um=(sgn * W) % HW, sh_up=(-sgn * W) % HW,
        sh_hm=(sgn * 1) % HW, sh_hp=(-sgn * 1) % HW,
        k0=k0, k1=k1, k2=k2,
        s0=k0 * scale, s1=k1 * scale, s2=k2 * scale)

    xf = x.reshape(NC, HW)   # free reshape: NCHW memory is already this layout
    out = pl.pallas_call(
        kern,
        out_shape=jax.ShapeDtypeStruct((NC, HW), x.dtype),
        grid=(n_blocks,),
        in_specs=[pl.BlockSpec((bc, HW), lambda i: (i, 0))],
        out_specs=pl.BlockSpec((bc, HW), lambda i: (i, 0)),
        compiler_params=pltpu.CompilerParams(
            dimension_semantics=("parallel",),
            vmem_limit_bytes=vmem_limit),
        cost_estimate=pl.CostEstimate(
            flops=10 * NC * HW, transcendentals=0,
            bytes_accessed=2 * NC * HW * elt),
    )(xf)
    return out.reshape(N, C, H, W)


def make_blur_kernel_weights(channels, kernel=(1, 2, 1), normalize=True):
    """Deterministic buffer construction, identical to BlurLayer.__init__."""
    k = np.array(kernel, dtype=np.float32).reshape(1, -1)
    k = k.T.dot(k)
    if normalize:
        k = k / np.sum(k)
    k = k[np.newaxis, np.newaxis]              # (1, 1, 3, 3)
    k = np.tile(k, [channels, 1, 1, 1])        # (C, 1, 3, 3)
    return jnp.asarray(k)


def blur_reference(x, kernel_c133):
    """Plain-JAX reference matching F.conv2d(..., padding=1, groups=C)."""
    C = x.shape[1]
    return lax.conv_general_dilated(
        x, kernel_c133,
        window_strides=(1, 1),
        padding=((1, 1), (1, 1)),
        dimension_numbers=("NCHW", "OIHW", "NCHW"),
        feature_group_count=C,
    )


# TODO(synk): the custom autograd pair (Blur / BlurBackPropagation) is a
# backward-pass optimization for gradient penalty; this reproduces the
# forward pass only.

if __name__ == "__main__":
    N, C, H, W = 2, 4, 16, 16
    key = jax.random.PRNGKey(0)
    x = jax.random.normal(key, (N, C, H, W), dtype=jnp.float32)

    out = blur(x)
    out = jax.block_until_ready(out)

    ref = blur_reference(x, make_blur_kernel_weights(C))
    np.testing.assert_allclose(np.asarray(out), np.asarray(ref),
                               rtol=1e-5, atol=1e-5)
    print("KERNEL_OK")
</pallas_src>

<mosaic_0001>
module attributes {stable_mosaic.version = 11 : i64} {
  func.func @probe(%arg0: memref<8x128xf32, #tpu.memory_space<vmem>>, %arg1: memref<8x128xf32, #tpu.memory_space<vmem>>) attributes {dimension_semantics = [], scalar_prefetch = 0 : i64, scratch_operands = 0 : i64, tpu.core_type = #tpu.core_type<tc>} {
    %c0 = arith.constant 0 : index
    %c0_0 = arith.constant 0 : index
    %0 = vector.load %arg0[%c0, %c0_0] : memref<8x128xf32, #tpu.memory_space<vmem>>, vector<8x128xf32>
    %c1_i32 = arith.constant 1 : i32
    %1 = tpu.dynamic_rotate %0 by %c1_i32 dim 1 : vector<8x128xf32>, i32 -> vector<8x128xf32>
    %c0_1 = arith.constant 0 : index
    %c0_2 = arith.constant 0 : index
    %2 = vector.load %arg1[%c0_1, %c0_2] : memref<8x128xf32, #tpu.memory_space<vmem>>, vector<8x128xf32>
    tpu.vector_store %arg1[%c0_1, %c0_2], %1 {strides = array<i32>} : memref<8x128xf32, #tpu.memory_space<vmem>>, vector<8x128xf32>,
    return
  }
}

</mosaic_0001>

<bundles_post_ra>
// kernel: tpu_custom_call.1
= control target key start
LH: loop header
LB: loop body
LE: loop exit
PB: predicated region body
PF: predicated region fallthrough
CT: control target
= control target key end

     0   :  { %6 = vsyncpa [#allocation3], 0  ;;  %s128_s0 = inlined_call_operand.hbm [shape: f32[8,128], index: 0, kind: input, shape index: {}]   ;;  %s129_s1 = inlined_call_operand.hbm [shape: f32[8,128], index: 1, kind: output, shape index: {}]  }
   0x1   :  { %7 = vsyncpa [#allocation4], 0  ;;  %s91_s6 = smov [#allocation2]   ;;  %s43_s10 = scalar_lea.hbm %s128_s0, 128 }
   0x2   :  { %s14_s7 = sshll.u32 %s91_s6, 4  ;;  %p44_p0 = scmp.ne.s32.totalorder %s128_s0, %s43_s10  ;;  %s15_s7 = int_to_ptr.vmem [resolvable:$true] %s14_s7 }
   0x3   :  { %p47_p1 = scmp.lt.u32.totalorder %s43_s10, %s128_s0 }
   0x5   :  { %p49_p2 = pnand %p47_p1, %p44_p0 }
   0x7   :  { %52 = shalt.err (!%p49_p2)
}
   0x8   :  { %s53_s15 = scalar_lea.vmem %s15_s7, 128  ;;  %p58_p4 = scmp.lt.s32.totalorder %s15_s7, %s15_s7 }
   0x9   :  { %p54_p3 = scmp.ne.s32.totalorder %s15_s7, %s53_s15  ;;  %p59_p5 = scmp.lt.s32.totalorder %s53_s15, %s53_s15 }
   0xb   :  { %p60_p6 = por %p59_p5, %p58_p4 }
   0xd   :  { %p61_p7 = pnand %p60_p6, %p54_p3 }
   0xf   :  { %64 = shalt.err (!%p61_p7)
}
  0x10   :  { %17 = dma.hbm_to_vmem [thread:$0]  %s128_s0, 128, %s15_s7, [#allocation3]  }
  0x11   :  { %87 = dma.done.wait [#allocation3], 128  }
  0x12   :  { %88 = vsyncadd [#allocation3], 4294967168  ;;  %v21_v0 = vld [vmem:[#allocation2] sm:$0xff]  ;;  %s92_s18 = smov 1   ;;  %s93_s19 = smov [#allocation5]  }
  0x13   :  { %22 = vrot.lane.b32.xlu0 %v21_v0, %s92_s18  ;;  %s31_s20 = sshll.u32 %s93_s19, 4  ;;  %s32_s20 = int_to_ptr.vmem [resolvable:$true] %s31_s20 }
  0x14   :  { %s65_s21 = scalar_lea.vmem %s32_s20, 128  ;;  %p70_p9 = scmp.lt.s32.totalorder %s32_s20, %s32_s20 }
  0x15   :  { %p66_p8 = scmp.ne.s32.totalorder %s32_s20, %s65_s21  ;;  %p71_p10 = scmp.lt.s32.totalorder %s65_s21, %s65_s21 }
  0x17   :  { %p72_p11 = por %p71_p10, %p70_p9 }
  0x19   :  { %p73_p12 = pnand %p72_p11, %p66_p8 }
  0x85   :  { %v23_v1 = vpop.permute.xlu0 %22 }
  0x86   :  { %24 = vst [vmem:[#allocation5] sm:$0xff] %v23_v1 }
  0x87   :  { %76 = shalt.err (!%p73_p12)
}
  0x88   :  { %s77_s0 = scalar_lea.hbm %s129_s1, 128 }
  0x89   :  { %p78_p13 = scmp.ne.s32.totalorder %s129_s1, %s77_s0  ;;  %p81_p0 = scmp.lt.u32.totalorder %s77_s0, %s129_s1 }
  0x8b   :  { %p83_p1 = pnand %p81_p0, %p78_p13 }
  0x8d   :  { %86 = shalt.err (!%p83_p1)
}
  0x8e   :  { %34 = dma.vmem_to_hbm [thread:$0]  %s32_s20, 128, %s129_s1, [#allocation4]  }
  0x8f   :  { %89 = dma.done.wait [#allocation4], 128  }
  0x90   :  { %90 = vsyncadd [#allocation4], 4294967168 }
  0x91   :  { %38 = vsyncpa [#allocation3], 1 }
  0x92   :  { %39 = vsyncpa [#allocation4], 1 }

</bundles_post_ra>
